<compile_context>
chip_gen: v7x
topology: tpu7x:2x2x1
jax: 0.10.0
libtpu: 0.0.40
codegen_flags: <defaults>
</compile_context>

<pallas_src>
import jax
import jax.numpy as jnp
from jax.experimental import pallas as pl
from jax.experimental.pallas import tpu as pltpu


# ----------------------------------------------------------------------------
# Kernel A: get_edge_vectors_and_lengths (vector math part).
#   Lane-dense (3, TE) tiles, edge axis on lanes, "parallel" edge grid.
#   The data-dependent row gather (positions[sender] / positions[receiver]) is
#   done in the wrapper with XLA's fused gather -- arbitrary VMEM gathers have
#   no reliable Mosaic lowering, and the previous in-kernel scalar loop was the
#   dominant latency bottleneck.
# ----------------------------------------------------------------------------
def _edge_kernel(psnd_ref, prcv_ref, shift_ref, vec_ref, len_ref):
    v = prcv_ref[...] - psnd_ref[...] + shift_ref[...]          # (3, TE) VPU
    vec_ref[...] = v                                            # lane-dense store
    len_ref[...] = jnp.sqrt(jnp.sum(v * v, axis=0, keepdims=True))  # (1, TE)


def get_edge_vectors_and_lengths(positions, edge_index, shifts, *, max_edge_tile=512):
    n_edges = edge_index.shape[1]
    sender = edge_index[0]
    receiver = edge_index[1]

    pos = positions.astype(jnp.float32)
    # XLA fused gathers; .T is layout plumbing to get edges on the lane axis.
    psnd_t = pos[sender].T                                       # (3, E)
    prcv_t = pos[receiver].T                                     # (3, E)
    shifts_t = shifts.astype(jnp.float32).T                      # (3, E)

    te = max(128, min(max_edge_tile, pl.next_power_of_2(n_edges)))
    e_pad = pl.cdiv(n_edges, te) * te                            # pad, never one giant tile

    def _pad(x):
        return jnp.pad(x, ((0, 0), (0, e_pad - n_edges)))

    psnd_t, prcv_t, shifts_t = _pad(psnd_t), _pad(prcv_t), _pad(shifts_t)

    grid_spec = pltpu.PrefetchScalarGridSpec(
        num_scalar_prefetch=0,
        grid=(e_pad // te,),
        in_specs=[pl.BlockSpec((3, te), lambda e: (0, e))] * 3,
        out_specs=[
            pl.BlockSpec((3, te), lambda e: (0, e)),             # edge vectors (3, TE)
            pl.BlockSpec((1, te), lambda e: (0, e)),             # lengths (1, TE)
        ],
    )
    vec_t, len_row = pl.pallas_call(
        _edge_kernel,
        out_shape=(
            jax.ShapeDtypeStruct((3, e_pad), jnp.float32),
            jax.ShapeDtypeStruct((1, e_pad), jnp.float32),
        ),
        grid_spec=grid_spec,
        compiler_params=pltpu.CompilerParams(
            dimension_semantics=("parallel",),
            vmem_limit_bytes=32 * 1024 * 1024,
        ),
    )(psnd_t, prcv_t, shifts_t)

    vectors = vec_t[:, :n_edges].T                               # (E, 3)
    lengths = len_row[:, :n_edges].T                             # (E, 1)
    return vectors, lengths


# ----------------------------------------------------------------------------
# Kernel B: fused surrogate model + num_atoms + voigt->tensor epilogue.
#   grid = (n_cores, tiles_per_core); atom axis tiled (TN lanes per tile),
#   segment mask built per tile only, (7, B) energy/stress partials accumulated
#   in VMEM scratch, per-core partials summed in the wrapper.
# ----------------------------------------------------------------------------
def _fused_model_kernel(pos_t_ref, ptr_ref, w_ref,
                        energy_ref, forces_t_ref, stress9_ref, natoms_ref,
                        acc_ref):
    core = pl.program_id(0)
    i = pl.program_id(1)
    n_tiles = pl.num_programs(1)
    tn = pos_t_ref.shape[1]
    b = ptr_ref.shape[1] - 1

    @pl.when(i == 0)
    def _():
        acc_ref[...] = jnp.zeros_like(acc_ref)

    pos_t = pos_t_ref[...]                                       # (3, TN)
    w = w_ref[...]                                               # (10, 3): [e | s0..5 | f0..2]

    # Single tiny MXU pass for all per-atom features; lane axis = atoms.
    y = jnp.dot(w, pos_t, preferred_element_type=jnp.float32)    # (10, TN)
    forces_t_ref[...] = y[7:10, :]                               # (3, TN) lane-dense store

    ptr = ptr_ref[...]                                           # (1, B+1) i32
    start = ptr[:, :b]                                           # (1, B)
    end = ptr[:, 1:]                                             # (1, B)

    # Per-tile segment mask only (bounded VMEM); global atom index = tile offset + iota.
    base = (core * n_tiles + i) * tn
    atom = base + jax.lax.broadcasted_iota(jnp.int32, (tn, b), 0)            # (TN, B)
    seg = ((atom >= start) & (atom < end)).astype(jnp.float32)               # (TN, B)

    # Accumulate energy (row 0) + voigt stress (rows 1..6) partials.
    acc_ref[...] += jnp.dot(y[0:7, :], seg, preferred_element_type=jnp.float32)  # (7, B)

    @pl.when(i == n_tiles - 1)
    def _():
        g = acc_ref[...]                                         # (7, B)
        energy_ref[...] = g[0:1, :].reshape((1, 1, b))
        s6 = g[1:7, :]                                           # xx, yy, zz, yz, xz, xy
        # Voigt -> row-major 3x3: assemble (9, B) in registers, single store.
        stress9 = jnp.concatenate(
            [s6[0:1], s6[5:6], s6[4:5],
             s6[5:6], s6[1:2], s6[3:4],
             s6[4:5], s6[3:4], s6[2:3]], axis=0)                 # (9, B)
        stress9_ref[...] = stress9.reshape((1, 9, b))
        # num_atoms = ptr[1:] - ptr[:-1]  (epilogue; no dedicated launch)
        natoms_ref[...] = (end - start).reshape((1, 1, b))


def surrogate_model(positions, ptr, w_e, w_f, w_s, *, max_atom_tile=2048, n_cores=2):
    n_atoms = positions.shape[0]
    n_graphs = ptr.shape[0] - 1

    # Atom tile (lane axis -> multiple of 128); pad N so the atom axis splits
    # evenly into n_cores * tiles_per_core tiles.  Padded atoms are zero and
    # fall outside [0, ptr[-1]), so they contribute nothing to the reductions.
    tn = max(128, min(max_atom_tile, pl.next_power_of_2(pl.cdiv(n_atoms, n_cores))))
    n_pad = pl.cdiv(n_atoms, n_cores * tn) * (n_cores * tn)
    tiles_per_core = n_pad // (n_cores * tn)

    pos_t = jnp.pad(positions.astype(jnp.float32).T, ((0, 0), (0, n_pad - n_atoms)))  # (3, Npad)
    ptr2d = ptr.astype(jnp.int32).reshape(1, n_graphs + 1)
    # Concatenated weights: rows [energy(1) | stress-voigt(6) | force(3)].
    w_all = jnp.concatenate(
        [w_e.astype(jnp.float32).T,
         w_s.astype(jnp.float32).T,
         w_f.astype(jnp.float32).T], axis=0)                     # (10, 3)

    grid_spec = pltpu.PrefetchScalarGridSpec(
        num_scalar_prefetch=0,
        grid=(n_cores, tiles_per_core),
        in_specs=[
            pl.BlockSpec((3, tn), lambda c, i: (0, c * tiles_per_core + i)),     # pos tile
            pl.BlockSpec((1, n_graphs + 1), lambda c, i: (0, 0)),                # ptr resident
            pl.BlockSpec((10, 3), lambda c, i: (0, 0)),                          # weights resident
        ],
        out_specs=[
            pl.BlockSpec((1, 1, n_graphs), lambda c, i: (c, 0, 0)),              # energy partial
            pl.BlockSpec((3, tn), lambda c, i: (0, c * tiles_per_core + i)),     # forces tile
            pl.BlockSpec((1, 9, n_graphs), lambda c, i: (c, 0, 0)),              # stress partial
            pl.BlockSpec((1, 1, n_graphs), lambda c, i: (c, 0, 0)),              # num_atoms
        ],
        scratch_shapes=[pltpu.VMEM((7, n_graphs), jnp.float32)],
    )
    energy_p, forces_t, stress9_p, natoms_p = pl.pallas_call(
        _fused_model_kernel,
        out_shape=(
            jax.ShapeDtypeStruct((n_cores, 1, n_graphs), jnp.float32),
            jax.ShapeDtypeStruct((3, n_pad), jnp.float32),
            jax.ShapeDtypeStruct((n_cores, 9, n_graphs), jnp.float32),
            jax.ShapeDtypeStruct((n_cores, 1, n_graphs), jnp.int32),
        ),
        grid_spec=grid_spec,
        compiler_params=pltpu.CompilerParams(
            dimension_semantics=("parallel", "arbitrary"),
            vmem_limit_bytes=32 * 1024 * 1024,
        ),
    )(pos_t, ptr2d, w_all)

    # Combine per-core partials / undo layout plumbing.
    energy = jnp.sum(energy_p[:, 0, :], axis=0)                  # (B,)
    stress = jnp.sum(stress9_p, axis=0).T.reshape(n_graphs, 3, 3)
    forces = forces_t[:, :n_atoms].T                             # (N, 3)
    num_atoms = natoms_p[0, 0, :]                                # (B,)
    return energy, forces, stress, num_atoms


# ----------------------------------------------------------------------------
# SevennetWrapper.forward
# ----------------------------------------------------------------------------
def sevennet_wrapper_forward(batch, params):
    # input.energy = input.y ; input.forces = input['force']  (plain aliasing)
    batch = dict(batch)
    batch["energy"] = batch["y"]
    batch["forces"] = batch["force"]

    edge_vec, edge_len = get_edge_vectors_and_lengths(
        batch["positions"], batch["edge_index"], batch["shifts"])
    batch["edge_vec"] = edge_vec
    batch["edge_len"] = edge_len   # lengths kept only for verification (module discards them)

    # TODO(synk): replace surrogate with the real SevenNet GNN when available.
    tot_e, force, stress, num_atoms = surrogate_model(
        batch["positions"], batch["ptr"],
        params["w_e"], params["w_f"], params["w_s"])
    batch["num_atoms"] = num_atoms

    y_pred = {
        "energy": tot_e,
        "forces": force,
        "stress": stress.astype(tot_e.dtype),
    }
    return y_pred, batch


if __name__ == "__main__":
    key = jax.random.PRNGKey(0)
    k_pos, k_snd, k_rcv, k_shift, k_y, k_f, k_we, k_wf, k_ws = jax.random.split(key, 9)

    N_ATOMS, N_EDGES, B = 8, 16, 2
    positions = jax.random.normal(k_pos, (N_ATOMS, 3), dtype=jnp.float32)
    sender = jax.random.randint(k_snd, (N_EDGES,), 0, N_ATOMS, dtype=jnp.int32)
    receiver = jax.random.randint(k_rcv, (N_EDGES,), 0, N_ATOMS, dtype=jnp.int32)
    edge_index = jnp.stack([sender, receiver], axis=0)
    shifts = 0.1 * jax.random.normal(k_shift, (N_EDGES, 3), dtype=jnp.float32)
    ptr = jnp.array([0, 4, 8], dtype=jnp.int32)

    batch = {
        "positions": positions,
        "edge_index": edge_index,
        "shifts": shifts,
        "ptr": ptr,
        "y": jax.random.normal(k_y, (B,), dtype=jnp.float32),
        "force": jax.random.normal(k_f, (N_ATOMS, 3), dtype=jnp.float32),
    }
    params = {
        "w_e": jax.random.normal(k_we, (3, 1), dtype=jnp.float32),
        "w_f": jax.random.normal(k_wf, (3, 3), dtype=jnp.float32),
        "w_s": jax.random.normal(k_ws, (3, 6), dtype=jnp.float32),
    }

    y_pred, out_batch = sevennet_wrapper_forward(batch, params)
    jax.block_until_ready(y_pred)

    # --- pure-JAX reference checks for the wrapper numerics ---
    vec_ref = positions[receiver] - positions[sender] + shifts
    len_ref = jnp.linalg.norm(vec_ref, axis=-1, keepdims=True)
    assert jnp.allclose(out_batch["edge_vec"], vec_ref, atol=1e-5)
    assert jnp.allclose(out_batch["edge_len"], len_ref, atol=1e-5)
    assert jnp.array_equal(out_batch["num_atoms"], ptr[1:] - ptr[:-1])

    seg_ids = jnp.repeat(jnp.arange(B), ptr[1:] - ptr[:-1], total_repeat_length=N_ATOMS)
    e_ref = jax.ops.segment_sum((positions @ params["w_e"])[:, 0], seg_ids, B)
    s6_ref = jax.ops.segment_sum(positions @ params["w_s"], seg_ids, B)
    assert jnp.allclose(y_pred["energy"], e_ref, atol=1e-4)
    assert jnp.allclose(y_pred["forces"], positions @ params["w_f"], atol=1e-4)
    t_ref = jnp.zeros((B, 3, 3), jnp.float32)
    t_ref = t_ref.at[:, 0, 0].set(s6_ref[:, 0]).at[:, 1, 1].set(s6_ref[:, 1]).at[:, 2, 2].set(s6_ref[:, 2])
    t_ref = t_ref.at[:, 1, 2].set(s6_ref[:, 3]).at[:, 2, 1].set(s6_ref[:, 3])
    t_ref = t_ref.at[:, 0, 2].set(s6_ref[:, 4]).at[:, 2, 0].set(s6_ref[:, 4])
    t_ref = t_ref.at[:, 0, 1].set(s6_ref[:, 5]).at[:, 1, 0].set(s6_ref[:, 5])
    assert jnp.allclose(y_pred["stress"], t_ref, atol=1e-4)

    print("KERNEL_OK")
</pallas_src>

<mosaic_0001>
module attributes {stable_mosaic.version = 11 : i64} {
  func.func @_edge_kernel(%arg0: i32, %arg1: memref<3x128xf32, #tpu.memory_space<vmem>>, %arg2: memref<3x128xf32, #tpu.memory_space<vmem>>, %arg3: memref<3x128xf32, #tpu.memory_space<vmem>>, %arg4: memref<3x128xf32, #tpu.memory_space<vmem>>, %arg5: memref<1x128xf32, #tpu.memory_space<vmem>>) attributes {dimension_semantics = [#tpu.dimension_semantics<parallel>], iteration_bounds = array<i64: 1>, scalar_prefetch = 0 : i64, scratch_operands = 0 : i64, tpu.core_type = #tpu.core_type<tc>, window_params = [{transform_indices = @transform_0, window_bounds = array<i64: 3, 128>}, {transform_indices = @transform_1, window_bounds = array<i64: 3, 128>}, {transform_indices = @transform_2, window_bounds = array<i64: 3, 128>}, {transform_indices = @transform_3, window_bounds = array<i64: 3, 128>}, {transform_indices = @transform_4, window_bounds = array<i64: 1, 128>}]} {
    %c0 = arith.constant 0 : index
    %c0_0 = arith.constant 0 : index
    %0 = vector.load %arg2[%c0, %c0_0] : memref<3x128xf32, #tpu.memory_space<vmem>>, vector<3x128xf32>
    %c0_1 = arith.constant 0 : index
    %c0_2 = arith.constant 0 : index
    %1 = vector.load %arg1[%c0_1, %c0_2] : memref<3x128xf32, #tpu.memory_space<vmem>>, vector<3x128xf32>
    %2 = arith.subf %0, %1 : vector<3x128xf32>
    %c0_3 = arith.constant 0 : index
    %c0_4 = arith.constant 0 : index
    %3 = vector.load %arg3[%c0_3, %c0_4] : memref<3x128xf32, #tpu.memory_space<vmem>>, vector<3x128xf32>
    %4 = arith.addf %2, %3 : vector<3x128xf32>
    %c0_5 = arith.constant 0 : index
    %c0_6 = arith.constant 0 : index
    %5 = vector.load %arg4[%c0_5, %c0_6] : memref<3x128xf32, #tpu.memory_space<vmem>>, vector<3x128xf32>
    tpu.vector_store %arg4[%c0_5, %c0_6], %4 {strides = array<i32>} : memref<3x128xf32, #tpu.memory_space<vmem>>, vector<3x128xf32>,
    %6 = arith.mulf %4, %4 : vector<3x128xf32>
    %cst = arith.constant dense<0.000000e+00> : vector<128xf32>
    %7 = vector.multi_reduction <add>, %6, %cst [0] : vector<3x128xf32> to vector<128xf32>
    %8 = vector.shape_cast %7 : vector<128xf32> to vector<1x128xf32>
    %9 = math.sqrt %8 : vector<1x128xf32>
    %c0_7 = arith.constant 0 : index
    %c0_8 = arith.constant 0 : index
    %10 = vector.load %arg5[%c0_7, %c0_8] : memref<1x128xf32, #tpu.memory_space<vmem>>, vector<1x128xf32>
    tpu.vector_store %arg5[%c0_7, %c0_8], %9 {strides = array<i32>} : memref<1x128xf32, #tpu.memory_space<vmem>>, vector<1x128xf32>,
    return
  }
  func.func @transform_0(%arg0: i32) -> (i32, i32) {
    %c0_i32 = arith.constant 0 : i32
    %c0_i32_0 = arith.constant 0 : i32
    return %c0_i32, %arg0 : i32, i32
  }
  func.func @transform_1(%arg0: i32) -> (i32, i32) {
    %c0_i32 = arith.constant 0 : i32
    %c0_i32_0 = arith.constant 0 : i32
    return %c0_i32, %arg0 : i32, i32
  }
  func.func @transform_2(%arg0: i32) -> (i32, i32) {
    %c0_i32 = arith.constant 0 : i32
    %c0_i32_0 = arith.constant 0 : i32
    return %c0_i32, %arg0 : i32, i32
  }
  func.func @transform_3(%arg0: i32) -> (i32, i32) {
    %c0_i32 = arith.constant 0 : i32
    %c0_i32_0 = arith.constant 0 : i32
    return %c0_i32, %arg0 : i32, i32
  }
  func.func @transform_4(%arg0: i32) -> (i32, i32) {
    %c0_i32 = arith.constant 0 : i32
    %c0_i32_0 = arith.constant 0 : i32
    return %c0_i32, %arg0 : i32, i32
  }
}

</mosaic_0001>

<bundles_post_ra>
// kernel: tpu_custom_call.1
= control target key start
LH: loop header
LB: loop body
LE: loop exit
PB: predicated region body
PF: predicated region fallthrough
CT: control target
= control target key end

     0   :  { %10 = vsyncpa [#allocation3], 0  ;;  %s278_s0 = inlined_call_operand.hbm [shape: f32[3,128], index: 0, kind: input, shape index: {}]   ;;  %s279_s1 = inlined_call_operand.hbm [shape: f32[3,128], index: 1, kind: input, shape index: {}]   ;;  %s280_s2 = inlined_call_operand.vmem [shape: f32[3,128], index: 2, kind: input, shape index: {}]   ;;  %s281_s3 = inlined_call_operand.hbm [shape: f32[3,128], index: 3, kind: output, shape index: {0}]   ;;  %s282_s4 = inlined_call_operand.hbm [shape: f32[1,128], index: 4, kind: output, shape index: {1}]  }
   0x1   :  { %11 = vsyncpa [#allocation6], 0 }
   0x2   :  { %12 = vsyncpa [#allocation4], 0 }
   0x3   :  { %13 = vsyncpa [#allocation9], 0  ;;  %s197_s15 = smov [#allocation2]   ;;  %s198_s17 = smov [#allocation5]  }
   0x4   :  { %s20_s16 = sshll.u32 %s197_s15, 4  ;;  %s30_s18 = sshll.u32 %s198_s17, 4  ;;  %s21_s16 = int_to_ptr.vmem [resolvable:$true] %s20_s16  ;;  %s31_s18 = int_to_ptr.vmem [resolvable:$true] %s30_s18 }
   0x5   :  { %s101_s21 = scalar_lea.hbm %s278_s0, 64 }
   0x6   :  { %p102_p0 = scmp.ne.s32.totalorder %s278_s0, %s101_s21  ;;  %p105_p1 = scmp.lt.u32.totalorder %s101_s21, %s278_s0 }
   0x8   :  { %p107_p2 = pnand %p105_p1, %p102_p0 }
   0xa   :  { %110 = shalt.err (!%p107_p2)
}
   0xb   :  { %s111_s26 = scalar_lea.vmem %s21_s16, 64  ;;  %p116_p4 = scmp.lt.s32.totalorder %s21_s16, %s21_s16 }
   0xc   :  { %p112_p3 = scmp.ne.s32.totalorder %s21_s16, %s111_s26  ;;  %p117_p5 = scmp.lt.s32.totalorder %s111_s26, %s111_s26 }
   0xe   :  { %p118_p6 = por %p117_p5, %p116_p4 }
  0x10   :  { %p119_p7 = pnand %p118_p6, %p112_p3 }
  0x12   :  { %122 = shalt.err (!%p119_p7)
}
  0x13   :  { %23 = dma.hbm_to_vmem [thread:$0]  %s278_s0, 64, %s21_s16, [#allocation3]  }
  0x14   :  { %s123_s5 = scalar_lea.hbm %s279_s1, 64 }
  0x15   :  { %p124_p8 = scmp.ne.s32.totalorder %s279_s1, %s123_s5  ;;  %p127_p9 = scmp.lt.u32.totalorder %s123_s5, %s279_s1 }
  0x17   :  { %p129_p10 = pnand %p127_p9, %p124_p8 }
  0x19   :  { %132 = shalt.err (!%p129_p10)
}
  0x1a   :  { %s133_s10 = scalar_lea.vmem %s31_s18, 64  ;;  %p138_p12 = scmp.lt.s32.totalorder %s31_s18, %s31_s18 }
  0x1b   :  { %p134_p11 = scmp.ne.s32.totalorder %s31_s18, %s133_s10  ;;  %p139_p13 = scmp.lt.s32.totalorder %s133_s10, %s133_s10 }
  0x1d   :  { %p140_p0 = por %p139_p13, %p138_p12 }
  0x1f   :  { %p141_p1 = pnand %p140_p0, %p134_p11 }
  0x21   :  { %144 = shalt.err (!%p141_p1)
}
  0x22   :  { %33 = dma.hbm_to_vmem [thread:$0]  %s279_s1, 64, %s31_s18, [#allocation6]  }
  0x23   :  { %189 = dma.done.wait [#allocation3], 64  }
  0x24   :  { %190 = vsyncadd [#allocation3], 4294967232 }
  0x25   :  { %191 = dma.done.wait [#allocation6], 64  }
  0x26   :  { %192 = vsyncadd [#allocation6], 4294967232  ;;  %s199_s12 = smov [#allocation7]   ;;  %v42_v0 = vld [vmem:[#allocation5] sm:$0x7]  ;;  %vm49_vm0 = vcmask 1042432  }
  0x27   :  { %s71_s13 = sshll.u32 %s199_s12, 4  ;;  %v43_v1 = vld [vmem:[#allocation2] sm:$0x7]  ;;  %s72_s13 = int_to_ptr.vmem [resolvable:$true] %s71_s13 }
  0x28   :  { %v45_v2 = vld [vmem:[%s280_s2] sm:$0x7]  ;;  %v44_v3 = vsub.f32 %v42_v0, %v43_v1  ;;  %s145_s16 = scalar_lea.vmem %s72_s13, 64  ;;  %p150_p3 = scmp.lt.s32.totalorder %s72_s13, %s72_s13 }
  0x29   :  { %p146_p2 = scmp.ne.s32.totalorder %s72_s13, %s145_s16  ;;  %p151_p4 = scmp.lt.s32.totalorder %s145_s16, %s145_s16 }
  0x2a   :  { %v46_v4 = vadd.f32 %v45_v2, %v44_v3 }
  0x2b   :  { %p152_p5 = por %p151_p4, %p150_p3 }
  0x2c   :  { %47 = vst [vmem:[#allocation7] sm:$0x7] %v46_v4  ;;  %v48_v5 = vmul.f32 %v46_v4, %v46_v4 }
  0x2d   :  { %p153_p6 = pnand %p152_p5, %p146_p2 }
  0x2f   :  { %156 = shalt.err (!%p153_p6)
}
  0x30   :  { %s157_s18 = scalar_lea.hbm %s281_s3, 64 }
  0x31   :  { %p158_p7 = scmp.ne.s32.totalorder %s281_s3, %s157_s18  ;;  %p161_p8 = scmp.lt.u32.totalorder %s157_s18, %s281_s3 }
  0x33   :  { %p163_p9 = pnand %p161_p8, %p158_p7 }
  0x35   :  { %166 = shalt.err (!%p163_p9)
}
  0x36   :  { %74 = dma.vmem_to_hbm [thread:$0]  %s72_s13, 64, %s281_s3, [#allocation4]   ;;  %v50_v6 = vsel %vm49_vm0, %v48_v5, 0.0 }
  0x37   :  { %v51_v7 = vrot.slane %v50_v6, 4  ;;  %s200_s24 = smov [#allocation8]  }
  0x38   :  { %s81_s25 = sshll.u32 %s200_s24, 4  ;;  %s82_s25 = int_to_ptr.vmem [resolvable:$true] %s81_s25 }
  0x39   :  { %v52_v8 = vadd.f32 %v51_v7, %v50_v6  ;;  %s167_s3 = scalar_lea.vmem %s82_s25, 16  ;;  %s171_s26 = scalar_lea.vmem %s82_s25, 32 }
  0x3a   :  { %p168_p10 = scmp.ne.s32.totalorder %s82_s25, %s167_s3  ;;  %p172_p11 = scmp.lt.s32.totalorder %s82_s25, %s82_s25 }
  0x3b   :  { %v53_v9 = vrot.slane %v52_v8, 2  ;;  %p173_p12 = scmp.lt.s32.totalorder %s171_s26, %s167_s3 }
  0x3d   :  { %v54_v10 = vadd.f32 %v53_v9, %v52_v8  ;;  %p174_p13 = por %p173_p12, %p172_p11 }
  0x3f   :  { %v55_v11 = vrot.slane %v54_v10, 1  ;;  %p175_p0 = pnand %p174_p13, %p168_p10 }
  0x41   :  { %v56_v12 = vadd.f32 %v55_v11, %v54_v10 }
  0x43   :  { %99 = vrsqrt.f32 %v56_v12  ;;  %vm59_vm1 = vcmp.eq.f32.partialorder %v56_v12, inf  ;;  %v62_v14 = vand.u32 2147483648, %v56_v12  ;;  %vm61_vm2 = vcmp.eq.f32.partialorder %v56_v12, 0.0 }
  0x4d   :  { %v100_v13 = vpop.eup %99 }
  0x4e   :  { %v58_v15 = vmul.f32 %v100_v13, %v56_v12 }
  0x50   :  { %v60_v16 = vsel %vm59_vm1, %v56_v12, %v58_v15 }
  0x51   :  { %v63_v17 = vsel %vm61_vm2, %v62_v14, %v60_v16 }
  0x52   :  { %64 = vst [vmem:[#allocation8] sm:$0x1] %v63_v17 }
  0x53   :  { %178 = shalt.err (!%p175_p0)
}
  0x54   :  { %s179_s29 = scalar_lea.hbm %s282_s4, 16 }
  0x55   :  { %p180_p1 = scmp.ne.s32.totalorder %s282_s4, %s179_s29  ;;  %p183_p2 = scmp.lt.u32.totalorder %s179_s29, %s282_s4 }
  0x57   :  { %p185_p3 = pnand %p183_p2, %p180_p1 }
  0x59   :  { %188 = shalt.err (!%p185_p3)
}
  0x5a   :  { %84 = dma.vmem_to_hbm [thread:$0]  %s82_s25, 16, %s282_s4, [#allocation9]  }
  0x5b   :  { %193 = dma.done.wait [#allocation4], 64  }
  0x5c   :  { %194 = vsyncadd [#allocation4], 4294967232 }
  0x5d   :  { %195 = dma.done.wait [#allocation9], 16  }
  0x5e   :  { %196 = vsyncadd [#allocation9], 4294967280 }
  0x5f   :  { %91 = vsyncpa [#allocation3], 1 }
  0x60   :  { %92 = vsyncpa [#allocation6], 1 }
  0x61   :  { %93 = vsyncpa [#allocation4], 1 }
  0x62   :  { %94 = vsyncpa [#allocation9], 1 }

</bundles_post_ra>
